<compile_context>
chip_gen: v7x
topology: tpu7x:2x2x1
jax: 0.10.0
libtpu: 0.0.40
codegen_flags: <defaults>
</compile_context>

<pallas_src>
import functools

import jax
import jax.numpy as jnp
from jax import lax
from jax.experimental import pallas as pl
from jax.experimental.pallas import tpu as pltpu

H = 32                 # hidden width of each head
FUSED_H = 2 * H        # 64: policy hidden | value hidden, side by side
BIAS_COL = FUSED_H     # hidden column 64 carries the constant-1 "bias" unit
LANES = 128            # everything is padded to one vreg lane width
K1 = 16                # padded feature width (obs + 1 bias col, rounded to bf16 sublane tile)
MAX_TILE_B = 512       # batch-tile cap: fills MXU rows, stays small in VMEM on v7x


def _round_up(n, m):
    return ((n + m - 1) // m) * m


# ---------------------------------------------------------------------------
# Kernel: fused 3-matmul actor-critic forward + masked log-softmax.
# ---------------------------------------------------------------------------
def _fused_actor_critic_kernel(x_ref, slab_ref, out_ref, *, action_space):
    # x_ref: (TILE_B, K1) f32, col `obs` == 1.0 (fused layer-1 bias), rest zero-padded.
    x = x_ref[...].astype(jnp.bfloat16)                   # bf16 MXU inputs

    w1 = slab_ref[0:K1, :]                                # (K1, 128)   bf16, layer 1 (+bias row)
    w2 = slab_ref[K1:K1 + LANES, :]                       # (128, 128)  block-diag, bias row 64
    w3 = slab_ref[K1 + LANES:K1 + 2 * LANES, :]           # (128, 128)  block-diag, bias row 64

    # Layer 1 (bias fused via the 1.0 column of x); f32 accumulation on the MXU.
    z1 = jnp.dot(x, w1, preferred_element_type=jnp.float32)          # (TILE_B, 128) f32
    lane = lax.broadcasted_iota(jnp.int32, z1.shape, 1)               # (TILE_B, 128)
    h1 = jnp.where(lane == BIAS_COL, 1.0, jnp.tanh(z1))               # activations stay f32 (v5e)

    # Layer 2 (row 64 of w2 = fused biases).
    z2 = jnp.dot(h1.astype(jnp.bfloat16), w2, preferred_element_type=jnp.float32)
    h2 = jnp.where(lane == BIAS_COL, 1.0, jnp.tanh(z2))

    # Layer 3 (row 64 of w3 = fused biases): cols [0:A] = logits, col A = value.
    z3 = jnp.dot(h2.astype(jnp.bfloat16), w3, preferred_element_type=jnp.float32)

    # Numerically stable log_softmax over the logit columns only.
    # Mask BEFORE exp so no inf is ever generated on the value / padding lanes.
    is_logit = lane < action_space
    m = jnp.max(jnp.where(is_logit, z3, -jnp.inf), axis=-1, keepdims=True)
    shifted = jnp.where(is_logit, z3 - m, 0.0)
    sumexp = jnp.sum(jnp.where(is_logit, jnp.exp(shifted), 0.0), axis=-1, keepdims=True)
    logp = shifted - jnp.log(sumexp)

    # Logit cols -> log-probs; col A keeps the raw value; remaining cols carry junk zeros.
    out_ref[...] = jnp.where(is_logit, logp, z3).astype(out_ref.dtype)


# ---------------------------------------------------------------------------
# Wrapper
# ---------------------------------------------------------------------------
@functools.partial(jax.jit, static_argnames=("action_space",))
def actor_critic_forward(x, slab, action_space):
    """x: (B, obs_space) f32; slab: packed bf16 param slab.  Returns (log_p (B,A), v (B,1))."""
    B, obs = x.shape

    # Batch tile: small batches collapse to one full-array tile; large vectorized-env
    # batches use 512-row tiles (MXU-row-filling on v6e/v7x, tiny VMEM footprint on v7x).
    tile_b = min(MAX_TILE_B, _round_up(B, 8))
    bp = _round_up(B, tile_b)

    # Feature pad + fused bias column (one tiny fused XLA op under jit).
    # TODO(synk): in a scan-fused rollout, hoist this padding into the env-batch producer.
    x_pad = (jnp.zeros((bp, K1), jnp.float32)
             .at[:B, :obs].set(x)
             .at[:B, obs].set(1.0))

    grid = (bp // tile_b,)
    slab_rows = slab.shape[0]

    flops = 2 * bp * LANES * (K1 + 2 * LANES)
    transcendentals = 4 * bp * LANES                     # 2x tanh + exp + log per lane
    bytes_accessed = x_pad.size * 4 + slab.size * 2 + bp * LANES * 4
    cost = pl.CostEstimate(flops=flops, transcendentals=transcendentals,
                           bytes_accessed=bytes_accessed)

    out = pl.pallas_call(
        functools.partial(_fused_actor_critic_kernel, action_space=action_space),
        out_shape=jax.ShapeDtypeStruct((bp, LANES), jnp.float32),
        grid_spec=pltpu.PrefetchScalarGridSpec(
            num_scalar_prefetch=0,
            grid=grid,
            in_specs=[
                pl.BlockSpec((tile_b, K1), lambda b: (b, 0)),          # batch-tiled input
                pl.BlockSpec((slab_rows, LANES), lambda b: (0, 0)),    # slab: DMA'd once, VMEM-resident
            ],
            out_specs=pl.BlockSpec((tile_b, LANES), lambda b: (b, 0)),  # lane-dense fused output
        ),
        compiler_params=pltpu.CompilerParams(
            dimension_semantics=("parallel",)),            # v7x: shard batch tiles over 2 TCs
        cost_estimate=cost,
    )(x_pad, slab)

    log_p = out[:B, :action_space]
    v = out[:B, action_space:action_space + 1]
    return log_p, v


# ---------------------------------------------------------------------------
# Parameter init (PyTorch nn.Linear default) + one-time packing into the slab.
# ---------------------------------------------------------------------------
def init_linear(key, fan_in, fan_out):
    """nn.Linear default init (uniform +-1/sqrt(fan_in)); weight stored as (in, out)."""
    kw, kb = jax.random.split(key)
    bound = 1.0 / jnp.sqrt(jnp.float32(fan_in))
    w = jax.random.uniform(kw, (fan_in, fan_out), jnp.float32, -bound, bound)
    b = jax.random.uniform(kb, (1, fan_out), jnp.float32, -bound, bound)
    return w, b


def init_params(key, obs_space, action_space, h=H):
    keys = jax.random.split(key, 6)
    pw1, pb1 = init_linear(keys[0], obs_space, h)
    pw2, pb2 = init_linear(keys[1], h, h)
    pw3, pb3 = init_linear(keys[2], h, action_space)
    vw1, vb1 = init_linear(keys[3], obs_space, h)
    vw2, vb2 = init_linear(keys[4], h, h)
    vw3, vb3 = init_linear(keys[5], h, 1)
    return dict(pw1=pw1, pb1=pb1, pw2=pw2, pb2=pb2, pw3=pw3, pb3=pb3,
                vw1=vw1, vb1=vb1, vw2=vw2, vb2=vb2, vw3=vw3, vb3=vb3)


def pack_params(params, obs_space, action_space, h=H):
    """Pack both heads into one (K1 + 256, 128) bf16 slab (done once, not per call)."""
    assert obs_space + 1 <= K1 and action_space + 1 <= h
    fh = 2 * h

    # Layer 1: [pw1 | vw1] in rows [0:obs], biases in row obs (hit by the 1.0 col of x).
    w1 = jnp.zeros((K1, LANES), jnp.float32)
    w1 = w1.at[:obs_space, 0:h].set(params["pw1"])
    w1 = w1.at[:obs_space, h:fh].set(params["vw1"])
    w1 = w1.at[obs_space, 0:h].set(params["pb1"].reshape(h))
    w1 = w1.at[obs_space, h:fh].set(params["vb1"].reshape(h))

    # Layer 2: block-diagonal, biases in row BIAS_COL (hit by hidden unit 64 == 1).
    w2 = jnp.zeros((LANES, LANES), jnp.float32)
    w2 = w2.at[0:h, 0:h].set(params["pw2"])
    w2 = w2.at[h:fh, h:fh].set(params["vw2"])
    w2 = w2.at[BIAS_COL, 0:h].set(params["pb2"].reshape(h))
    w2 = w2.at[BIAS_COL, h:fh].set(params["vb2"].reshape(h))

    # Layer 3: logits in cols [0:A], value in col A, biases in row BIAS_COL.
    w3 = jnp.zeros((LANES, LANES), jnp.float32)
    w3 = w3.at[0:h, 0:action_space].set(params["pw3"])
    w3 = w3.at[h:fh, action_space].set(params["vw3"].reshape(h))
    w3 = w3.at[BIAS_COL, 0:action_space].set(params["pb3"].reshape(action_space))
    w3 = w3.at[BIAS_COL, action_space].set(params["vb3"][0, 0])

    # bf16 weights + f32 MXU accumulation = deliberate precision choice (halves weight DMA).
    return jnp.concatenate([w1, w2, w3], axis=0).astype(jnp.bfloat16)   # (272, 128)


# ---------------------------------------------------------------------------
# Pure-JAX reference (mirrors the PyTorch module) for a correctness check.
# ---------------------------------------------------------------------------
def reference_forward(x, params):
    h1 = jnp.tanh(x @ params["pw1"] + params["pb1"])
    h2 = jnp.tanh(h1 @ params["pw2"] + params["pb2"])
    logit = h2 @ params["pw3"] + params["pb3"]
    log_p = jax.nn.log_softmax(logit, axis=-1)
    g1 = jnp.tanh(x @ params["vw1"] + params["vb1"])
    g2 = jnp.tanh(g1 @ params["vw2"] + params["vb2"])
    v = g2 @ params["vw3"] + params["vb3"]
    return log_p, v


if __name__ == "__main__":
    obs_space = 4      # CartPole-v1 observation dim
    action_space = 2   # CartPole-v1 action count
    batch = 8

    key = jax.random.PRNGKey(0)
    k_params, k_x = jax.random.split(key)
    params = init_params(k_params, obs_space, action_space, h=H)
    slab = pack_params(params, obs_space, action_space, h=H)
    x = jax.random.normal(k_x, (batch, obs_space), jnp.float32)

    log_p, v = actor_critic_forward(x, slab, action_space)
    jax.block_until_ready((log_p, v))

    # Sanity: shapes, probability normalization, agreement with the unfused f32 reference
    # (tolerance reflects the intentional bf16 weight storage; accumulation is f32).
    ref_logp, ref_v = reference_forward(x, params)
    assert log_p.shape == (batch, action_space)
    assert v.shape == (batch, 1)
    assert jnp.allclose(jnp.sum(jnp.exp(log_p), axis=-1), 1.0, atol=1e-5)
    assert jnp.allclose(log_p, ref_logp, atol=5e-2, rtol=5e-2)
    assert jnp.allclose(v, ref_v, atol=5e-2, rtol=5e-2)
    assert bool(jnp.all(jnp.isfinite(log_p))) and bool(jnp.all(jnp.isfinite(v)))

    print("KERNEL_OK")
</pallas_src>

<mosaic_0001>
module attributes {stable_mosaic.version = 11 : i64} {
  func.func @_fused_actor_critic_kernel(%arg0: i32, %arg1: memref<8x16xf32, #tpu.memory_space<vmem>>, %arg2: memref<272x128xbf16, #tpu.memory_space<vmem>>, %arg3: memref<8x128xf32, #tpu.memory_space<vmem>>) attributes {dimension_semantics = [#tpu.dimension_semantics<parallel>], iteration_bounds = array<i64: 1>, scalar_prefetch = 0 : i64, scratch_operands = 0 : i64, tpu.core_type = #tpu.core_type<tc>, window_params = [{transform_indices = @transform_0, window_bounds = array<i64: 8, 16>}, {pipeline_mode = #tpu.pipeline_mode<synchronous>, transform_indices = @transform_1, window_bounds = array<i64: 272, 128>}, {transform_indices = @transform_2, window_bounds = array<i64: 8, 128>}]} {
    %c0 = arith.constant 0 : index
    %c0_0 = arith.constant 0 : index
    %0 = vector.load %arg1[%c0, %c0_0] : memref<8x16xf32, #tpu.memory_space<vmem>>, vector<8x16xf32>
    %1 = arith.truncf %0 : vector<8x16xf32> to vector<8x16xbf16>
    %c0_1 = arith.constant 0 : index
    %c0_2 = arith.constant 0 : index
    %2 = vector.load %arg2[%c0_1, %c0_2] : memref<272x128xbf16, #tpu.memory_space<vmem>>, vector<16x128xbf16>
    %c16 = arith.constant 16 : index
    %c0_3 = arith.constant 0 : index
    %3 = vector.load %arg2[%c16, %c0_3] : memref<272x128xbf16, #tpu.memory_space<vmem>>, vector<128x128xbf16>
    %c144 = arith.constant 144 : index
    %c0_4 = arith.constant 0 : index
    %4 = vector.load %arg2[%c144, %c0_4] : memref<272x128xbf16, #tpu.memory_space<vmem>>, vector<128x128xbf16>
    %cst = arith.constant dense<0.000000e+00> : vector<8x128xf32>
    %5 = tpu.matmul %1, %2, %cst {dimension_numbers = #tpu.dot_dimension_numbers<[1], [0], [0], [1], [0, 0, 1, 1], [], []>} : vector<8x16xbf16>, vector<16x128xbf16>, vector<8x128xf32> -> vector<8x128xf32>
    %6 = tpu.iota {dimensions = array<i32: 1>} : vector<8x128xi32>
    %c64_i32 = arith.constant 64 : i32
    %7 = vector.broadcast %c64_i32 : i32 to vector<8x128xi32>
    %8 = arith.cmpi eq, %6, %7 : vector<8x128xi32>
    %9 = math.tanh %5 : vector<8x128xf32>
    %cst_5 = arith.constant 1.000000e+00 : f32
    %10 = vector.broadcast %cst_5 : f32 to vector<8x128xf32>
    %11 = arith.select %8, %10, %9 : vector<8x128xi1>, vector<8x128xf32>
    %12 = arith.truncf %11 : vector<8x128xf32> to vector<8x128xbf16>
    %cst_6 = arith.constant dense<0.000000e+00> : vector<8x128xf32>
    %13 = tpu.matmul %12, %3, %cst_6 {dimension_numbers = #tpu.dot_dimension_numbers<[1], [0], [0], [1], [0, 0, 1, 1], [], []>} : vector<8x128xbf16>, vector<128x128xbf16>, vector<8x128xf32> -> vector<8x128xf32>
    %c64_i32_7 = arith.constant 64 : i32
    %14 = vector.broadcast %c64_i32_7 : i32 to vector<8x128xi32>
    %15 = arith.cmpi eq, %6, %14 : vector<8x128xi32>
    %16 = math.tanh %13 : vector<8x128xf32>
    %cst_8 = arith.constant 1.000000e+00 : f32
    %17 = vector.broadcast %cst_8 : f32 to vector<8x128xf32>
    %18 = arith.select %15, %17, %16 : vector<8x128xi1>, vector<8x128xf32>
    %19 = arith.truncf %18 : vector<8x128xf32> to vector<8x128xbf16>
    %cst_9 = arith.constant dense<0.000000e+00> : vector<8x128xf32>
    %20 = tpu.matmul %19, %4, %cst_9 {dimension_numbers = #tpu.dot_dimension_numbers<[1], [0], [0], [1], [0, 0, 1, 1], [], []>} : vector<8x128xbf16>, vector<128x128xbf16>, vector<8x128xf32> -> vector<8x128xf32>
    %c2_i32 = arith.constant 2 : i32
    %21 = vector.broadcast %c2_i32 : i32 to vector<8x128xi32>
    %22 = arith.cmpi slt, %6, %21 : vector<8x128xi32>
    %cst_10 = arith.constant 0xFF800000 : f32
    %23 = vector.broadcast %cst_10 : f32 to vector<8x128xf32>
    %24 = arith.select %22, %20, %23 : vector<8x128xi1>, vector<8x128xf32>
    %cst_11 = arith.constant dense<0xFF800000> : vector<8xf32>
    %25 = vector.multi_reduction <maximumf>, %24, %cst_11 [1] : vector<8x128xf32> to vector<8xf32>
    %26 = vector.shape_cast %25 : vector<8xf32> to vector<8x1xf32>
    %27 = vector.broadcast %26 : vector<8x1xf32> to vector<8x128xf32>
    %28 = arith.subf %20, %27 : vector<8x128xf32>
    %cst_12 = arith.constant 0.000000e+00 : f32
    %29 = vector.broadcast %cst_12 : f32 to vector<8x128xf32>
    %30 = arith.select %22, %28, %29 : vector<8x128xi1>, vector<8x128xf32>
    %31 = math.exp %30 : vector<8x128xf32>
    %cst_13 = arith.constant 0.000000e+00 : f32
    %32 = vector.broadcast %cst_13 : f32 to vector<8x128xf32>
    %33 = arith.select %22, %31, %32 : vector<8x128xi1>, vector<8x128xf32>
    %cst_14 = arith.constant dense<0.000000e+00> : vector<8xf32>
    %34 = vector.multi_reduction <add>, %33, %cst_14 [1] : vector<8x128xf32> to vector<8xf32>
    %35 = vector.shape_cast %34 : vector<8xf32> to vector<8x1xf32>
    %36 = math.log %35 : vector<8x1xf32>
    %37 = vector.broadcast %36 : vector<8x1xf32> to vector<8x128xf32>
    %38 = arith.subf %30, %37 : vector<8x128xf32>
    %39 = arith.select %22, %38, %20 : vector<8x128xi1>, vector<8x128xf32>
    %c0_15 = arith.constant 0 : index
    %c0_16 = arith.constant 0 : index
    %40 = vector.load %arg3[%c0_15, %c0_16] : memref<8x128xf32, #tpu.memory_space<vmem>>, vector<8x128xf32>
    tpu.vector_store %arg3[%c0_15, %c0_16], %39 {strides = array<i32>} : memref<8x128xf32, #tpu.memory_space<vmem>>, vector<8x128xf32>,
    return
  }
  func.func @transform_0(%arg0: i32) -> (i32, i32) {
    %c0_i32 = arith.constant 0 : i32
    %c0_i32_0 = arith.constant 0 : i32
    return %arg0, %c0_i32 : i32, i32
  }
  func.func @transform_1(%arg0: i32) -> (i32, i32) {
    %c0_i32 = arith.constant 0 : i32
    %c0_i32_0 = arith.constant 0 : i32
    %c0_i32_1 = arith.constant 0 : i32
    return %c0_i32, %c0_i32_0 : i32, i32
  }
  func.func @transform_2(%arg0: i32) -> (i32, i32) {
    %c0_i32 = arith.constant 0 : i32
    %c0_i32_0 = arith.constant 0 : i32
    return %arg0, %c0_i32 : i32, i32
  }
}

</mosaic_0001>

<bundles_post_ra>
// kernel: actor_critic_forward.1
= control target key start
LH: loop header
LB: loop body
LE: loop exit
PB: predicated region body
PF: predicated region fallthrough
CT: control target
= control target key end

     0   :  { %7 = vsyncpa [#allocation3], 0  ;;  %s456_s9 = smov [#allocation2]   ;;  %s523_s0 = inlined_call_operand.vmem [shape: f32[8,16], index: 0, kind: input, shape index: {}]   ;;  %s524_s1 = inlined_call_operand.hbm [shape: bf16[272,128], index: 1, kind: input, shape index: {}]   ;;  %s525_s2 = inlined_call_operand.vmem [shape: f32[8,128], index: 2, kind: output, shape index: {}]  }
   0x1   :  { %s15_s10 = sshll.u32 %s456_s9, 4  ;;  %s432_s13 = scalar_lea.hbm %s524_s1, 2176  ;;  %s16_s10 = int_to_ptr.vmem [resolvable:$true] %s15_s10 }
   0x2   :  { %p433_p0 = scmp.ne.s32.totalorder %s524_s1, %s432_s13  ;;  %p436_p1 = scmp.lt.u32.totalorder %s432_s13, %s524_s1 }
   0x4   :  { %p438_p2 = pnand %p436_p1, %p433_p0 }
   0x6   :  { %441 = shalt.err (!%p438_p2)
}
   0x7   :  { %s442_s18 = scalar_lea.vmem %s16_s10, 2176  ;;  %p447_p4 = scmp.lt.s32.totalorder %s16_s10, %s16_s10 }
   0x8   :  { %p443_p3 = scmp.ne.s32.totalorder %s16_s10, %s442_s18  ;;  %p448_p5 = scmp.lt.s32.totalorder %s442_s18, %s442_s18 }
   0xa   :  { %p449_p6 = por %p448_p5, %p447_p4 }
   0xc   :  { %p450_p7 = pnand %p449_p6, %p443_p3 }
   0xe   :  { %453 = shalt.err (!%p450_p7)
}
   0xf   :  { %s457_s19 = smov 64   ;;  %s458_s20 = smov 4  }
  0x10   :  { %21 = dma.hbm_to_vmem [thread:$0]  %s524_s1, 2176, %s16_s10, [#allocation3], %s457_s19, %s457_s19, %s458_s20  }
  0x11   :  { %454 = dma.done.wait [#allocation3], 2176  }
  0x12   :  { %455 = vsyncadd [#allocation3], 4294965120  ;;  %v459_v0 = vmov 0.0   ;;  %vm460_vm0 = vmmov 0   ;;  %v407_v1 = vld [vmem:[#allocation2] sm:$0xff]   ;;  %vm68_vm1 = vcmask 130048   ;;  %v112_v18 = vlaneseq }
  0x13   :  { %356 = vmatprep.subr.bf16.mxu0 %v459_v0  ;;  %358 = vmatprep.mubr.msk.bf16.mxu0 %vm460_vm0, %v459_v0  ;;  %v26_v2 = vld [vmem:[%s523_s0] sm:$0xff]  ;;  %v408_v4 = vld [vmem:[#allocation2 + $0x8] sm:$0xff]   ;;  %v409_v5 = vld [vmem:[#allocation2 + $0x10] sm:$0xff]  }
  0x14   :  { %362 = vmatprep.subr.bf16.mxu1 %v459_v0  ;;  %378 = vmatprep.mubr.msk.bf16.mxu1 %vm460_vm0, %v459_v0  ;;  %v27_v3 = vpack.c.bf16 %v26_v2, %v26_v2  ;;  %v410_v6 = vld [vmem:[#allocation2 + $0x18] sm:$0xff]   ;;  %v411_v7 = vld [vmem:[#allocation2 + $0x20] sm:$0xff]   ;;  %v412_v8 = vld [vmem:[#allocation2 + $0x28] sm:$0xff]   ;;  %v113_v21 = vand.u32 127, %v112_v18 }
  0x15   :  { %357 = vmatpush3.bf16.msra.mxu0 %v407_v1  ;;  %363 = vmatpush3.bf16.msra.mxu1 %v408_v4  ;;  %v413_v9 = vld [vmem:[#allocation2 + $0x30] sm:$0xff]   ;;  %v414_v10 = vld [vmem:[#allocation2 + $0x38] sm:$0xff]   ;;  %v415_v11 = vld [vmem:[#allocation2 + $0x40] sm:$0xff]  }
  0x16   :  { %382 = vmatprep.subr.bf16.mxu0 %v459_v0  ;;  %364 = vmatprep.subr.bf16.mxu1 %v459_v0  ;;  %v416_v12 = vld [vmem:[#allocation2 + $0x48] sm:$0xff]   ;;  %v417_v13 = vld [vmem:[#allocation2 + $0x50] sm:$0xff]   ;;  %v418_v14 = vld [vmem:[#allocation2 + $0x58] sm:$0xff]   ;;  %vm114_vm2 = vcmp.eq.s32.totalorder %v113_v21, 64  ;;  %vm297_vm3 = vcmp.lt.s32.totalorder %v113_v21, 2 }
  0x17   :  { %v419_v15 = vld [vmem:[#allocation2 + $0x60] sm:$0xff]   ;;  %v420_v25 = vld [vmem:[#allocation2 + $0x68] sm:$0xff]   ;;  %v421_v26 = vld [vmem:[#allocation2 + $0x70] sm:$0xff]  }
  0x18   :  { %359 = vmatmul.mubr.msk.bf16.vlgmr.msra.gmra.mrb[0].mxu0 %vm68_vm1, %v27_v3  ;;  %v422_v27 = vld [vmem:[#allocation2 + $0x78] sm:$0xff]   ;;  %v423_v28 = vld [vmem:[#allocation2 + $0x80] sm:$0xff]  }
  0x19   :  { %398 = vmatprep.mubr.msk.bf16.mxu0 %vm460_vm0, %v459_v0  ;;  %365 = vmatpush3.bf16.msra.mxu1 %v409_v5 }
  0x1a   :  { %366 = vmatprep.subr.bf16.mxu1 %v459_v0  ;;  %383 = vmatpush3.bf16.msra.mxu0 %v416_v12 }
  0x1b   :  { %384 = vmatprep.subr.bf16.mxu0 %v459_v0 }
  0x1d   :  { %367 = vmatpush3.bf16.msra.mxu1 %v410_v6 }
  0x1e   :  { %368 = vmatprep.subr.bf16.mxu1 %v459_v0  ;;  %385 = vmatpush3.bf16.msra.mxu0 %v417_v13 }
  0x1f   :  { %386 = vmatprep.subr.bf16.mxu0 %v459_v0 }
  0x21   :  { %369 = vmatpush3.bf16.msra.mxu1 %v411_v7 }
  0x22   :  { %370 = vmatprep.subr.bf16.mxu1 %v459_v0  ;;  %387 = vmatpush3.bf16.msra.mxu0 %v418_v14 }
  0x23   :  { %388 = vmatprep.subr.bf16.mxu0 %v459_v0 }
  0x25   :  { %371 = vmatpush3.bf16.msra.mxu1 %v412_v8 }
  0x26   :  { %372 = vmatprep.subr.bf16.mxu1 %v459_v0  ;;  %389 = vmatpush3.bf16.msra.mxu0 %v419_v15 }
  0x27   :  { %390 = vmatprep.subr.bf16.mxu0 %v459_v0 }
  0x29   :  { %373 = vmatpush3.bf16.msra.mxu1 %v413_v9 }
  0x2a   :  { %374 = vmatprep.subr.bf16.mxu1 %v459_v0  ;;  %391 = vmatpush3.bf16.msra.mxu0 %v420_v25 }
  0x2b   :  { %392 = vmatprep.subr.bf16.mxu0 %v459_v0 }
  0x2d   :  { %375 = vmatpush3.bf16.msra.mxu1 %v414_v10 }
  0x2e   :  { %376 = vmatprep.subr.bf16.mxu1 %v459_v0  ;;  %393 = vmatpush3.bf16.msra.mxu0 %v421_v26 }
  0x2f   :  { %394 = vmatprep.subr.bf16.mxu0 %v459_v0 }
  0x31   :  { %377 = vmatpush3.bf16.msra.mxu1 %v415_v11 }
  0x32   :  { %395 = vmatpush3.bf16.msra.mxu0 %v422_v27 }
  0x33   :  { %396 = vmatprep.subr.bf16.mxu0 %v459_v0 }
  0x36   :  { %397 = vmatpush3.bf16.msra.mxu0 %v423_v28 }
  0xeb   :  { %v106_v16 = vpop.f32.mrb[0].mxu0 }
  0xec   :  { %424 = vtanh.f32 %v106_v16  ;;  %v360_v17 = vpop.f32.mrb[1].mxu0 }
  0xed   :  { %v109_v19 = vpop.f32.mrb[2].mxu0 }
  0xee   :  { %v361_v20 = vpop.f32.mrb[3].mxu0 }
  0xf6   :  { %v425_v22 = vpop.eup %424 }
  0xf7   :  { %v116_v23 = vsel %vm114_vm2, 1.0, %v425_v22 }
  0xf8   :  { %v117_v24 = vpack.c.bf16 %v116_v23, %v116_v23 }
  0xfa   :  { %379 = vmatmul.mubr.bf16.vlgmr.msra.gmra.mrb[0].mxu1 %v117_v24 }
 0x1cd   :  { %v200_v29 = vpop.f32.mrb[0].mxu1 }
 0x1ce   :  { %426 = vtanh.f32 %v200_v29  ;;  %v380_v30 = vpop.f32.mrb[1].mxu1 }
 0x1cf   :  { %v203_v31 = vpop.f32.mrb[2].mxu1 }
 0x1d0   :  { %v381_v32 = vpop.f32.mrb[3].mxu1 }
 0x1d8   :  { %v427_v33 = vpop.eup %426 }
 0x1d9   :  { %v207_v34 = vsel %vm114_vm2, 1.0, %v427_v33 }
 0x1da   :  { %v208_v35 = vpack.c.bf16 %v207_v34, %v207_v34 }
 0x1dc   :  { %399 = vmatmul.mubr.bf16.vlgmr.msra.gmra.mrb[4].mxu0 %v208_v35 }
 0x2af   :  { %v291_v36 = vpop.f32.mrb[4].mxu0 }
 0x2b0   :  { %v400_v37 = vpop.f32.mrb[5].mxu0  ;;  %v298_v38 = vsel %vm297_vm3, %v291_v36, -inf }
 0x2b1   :  { %299 = vmax.xlane.f32.xlu0 %v298_v38  ;;  %v294_v39 = vpop.f32.mrb[6].mxu0 }
 0x2b2   :  { %v401_v40 = vpop.f32.mrb[7].mxu0 }
 0x33e   :  { %v300_v41 = vpop.xlane.xlu0 %299 }
 0x33f   :  { %v301_v42 = vsub.f32 %v291_v36, %v300_v41 }
 0x341   :  { %v302_v43 = vsel %vm297_vm3, %v301_v42, 0.0 }
 0x342   :  { %v303_v44 = vmul.f32 1.442695, %v302_v43 }
 0x344   :  { %428 = vpow2.f32 %v303_v44 }
 0x34e   :  { %v429_v45 = vpop.eup %428 }
 0x34f   :  { %v305_v46 = vsel %vm297_vm3, %v429_v45, 0.0 }
 0x350   :  { %306 = vadd.xlane.f32.xlu0 %v305_v46 }
 0x3dd   :  { %v307_v47 = vpop.xlane.xlu0 %306 }
 0x3de   :  { %430 = vlog2.f32 %v307_v47 }
 0x3e8   :  { %v431_v48 = vpop.eup %430 }
 0x3e9   :  { %v309_v49 = vmul.f32 0.6931472, %v431_v48 }
 0x3eb   :  { %v310_v50 = vsub.f32 %v302_v43, %v309_v49 }
 0x3ed   :  { %v311_v51 = vsel %vm297_vm3, %v310_v50, %v291_v36 }
 0x3ee   :  { %312 = vst [vmem:[%s525_s2] sm:$0xff] %v311_v51 }
 0x3ef   :  { %317 = vsyncpa [#allocation3], 1 }

</bundles_post_ra>
